<compile_context>
chip_gen: v5e
topology: v5e:2x2
jax: 0.10.0
libtpu: 0.0.40
codegen_flags: <defaults>
</compile_context>

<pallas_src>
import jax
import jax.numpy as jnp
from jax.experimental import pallas as pl
from jax.experimental.pallas import tpu as pltpu


_LANE = 128
_VMEM_BUDGET = 20 * 1024 * 1024  # fits the 32 MiB default scoped VMEM limit
_GATE_PERM = [0, 1, 3, 2]        # torch order [i, f, g, o] -> packed [i, f, o, g]


def _round_up(x, m):
    return (x + m - 1) // m * m


def _choose_hidden_tile(Hp, K, compute_itemsize):
    """Largest hidden tile (multiple of 128 dividing Hp) within VMEM budget."""
    tn = _LANE
    for cand in (1024, 512, 256, 128):
        if Hp % cand == 0:
            tn = cand
            break
    tm = 128  # conservative batch-tile assumption for the footprint estimate

    def footprint(tn):
        w = K * 4 * tn * compute_itemsize        # weight tile
        xh = tm * K * compute_itemsize           # [x|h] tile
        bias = 4 * tn * 4
        c = tm * tn * 4
        outs = 2 * tm * tn * 4
        gates = 3 * tm * 4 * tn * 4              # rough in-kernel f32 temporaries
        return 2 * (w + xh + bias + c + outs) + gates  # x2: double-buffering

    while tn > _LANE and footprint(tn) > _VMEM_BUDGET:
        tn //= 2
    return tn


# ---------------------------------------------------------------------------
# Kernel
# ---------------------------------------------------------------------------
def lstm_cell_kernel(xh_ref, c_ref, w_ref, b_ref, hy_ref, cy_ref):
    tn = hy_ref.shape[-1]

    # One fused MXU matmul over K = input_size + hidden_size, f32 accumulate.
    gates = jnp.dot(xh_ref[...], w_ref[...],
                    preferred_element_type=jnp.float32) + b_ref[...]

    # Packed gate layout per hidden tile: [ i | f | o | g ], each tn lanes wide.
    # -> one contiguous sigmoid slab (i, f, o) and one tanh slab (g) on the EUP.
    sig = jax.nn.sigmoid(gates[:, : 3 * tn])
    g = jnp.tanh(gates[:, 3 * tn:])

    i = sig[:, :tn]
    f = sig[:, tn:2 * tn]
    o = sig[:, 2 * tn:3 * tn]

    c = c_ref[...]                       # f32
    cy = f * c + i * g                   # f32 cell update (v5e-friendly)
    hy = o * jnp.tanh(cy)

    hy_ref[...] = hy.astype(hy_ref.dtype)
    cy_ref[...] = cy.astype(cy_ref.dtype)


# ---------------------------------------------------------------------------
# One-time weight preparation (hoisted out of the per-call path)
# ---------------------------------------------------------------------------
def prepare_lstm_weights(weight_ih, weight_hh, bias_ih, bias_hh,
                         compute_dtype=jnp.bfloat16):
    """Pack torch-layout LSTMCell parameters for the Pallas kernel.

    weight_ih: [4H, I], weight_hh: [4H, H], biases: [4H] (torch gate order
    i|f|g|o). Returns a dict with the fused/permuted/padded weight
    [K, 4*Hp] (K = I + H), the folded bias [1, 4*Hp] and layout metadata.
    """
    four_h, I = weight_ih.shape
    H = four_h // 4
    K = I + H
    Hp = _round_up(H, _LANE)
    tn = _choose_hidden_tile(Hp, K, jnp.dtype(compute_dtype).itemsize)
    nt = Hp // tn

    # Fuse the contraction axis: [W_ih^T ; W_hh^T] -> [K, 4H].
    w = jnp.concatenate([weight_ih.T, weight_hh.T], axis=0)
    # Re-pack columns: gate-major -> per-hidden-tile [i|f|o|g].
    w = w.reshape(K, 4, H)[:, _GATE_PERM, :]
    w = jnp.pad(w, ((0, 0), (0, 0), (0, Hp - H)))
    w = w.reshape(K, 4, nt, tn).transpose(0, 2, 1, 3).reshape(K, 4 * Hp)

    b = (bias_ih + bias_hh).reshape(4, H)[_GATE_PERM, :]
    b = jnp.pad(b, ((0, 0), (0, Hp - H)))
    b = b.reshape(4, nt, tn).transpose(1, 0, 2).reshape(1, 4 * Hp)

    return dict(
        w=w.astype(compute_dtype),
        b=b.astype(jnp.float32),
        H=H, I=I, Hp=Hp, tn=tn,
    )


# ---------------------------------------------------------------------------
# Per-step apply
# ---------------------------------------------------------------------------
def lstm_cell_apply(params, x, hx=None):
    """Mirrors LSTMCell.forward with pre-packed params. Returns (hy, (hy, cy))."""
    w, b = params["w"], params["b"]
    H, Hp, tn = params["H"], params["Hp"], params["tn"]
    compute_dtype = w.dtype

    B = x.shape[0]
    dtype = x.dtype
    if hx is None:
        h = jnp.zeros((B, H), dtype=dtype)
        c = jnp.zeros((B, H), dtype=dtype)
    else:
        h, c = hx

    K = w.shape[0]
    tm = min(_round_up(B, 8), 128)
    Bp = _round_up(B, tm)

    # Fused activation operand [x | h] in the MXU compute dtype.
    xh = jnp.concatenate([x, h], axis=1).astype(compute_dtype)
    if Bp != B:
        xh = jnp.pad(xh, ((0, Bp - B), (0, 0)))
    c_p = c.astype(jnp.float32)
    if Bp != B or Hp != H:
        c_p = jnp.pad(c_p, ((0, Bp - B), (0, Hp - H)))

    grid = (Bp // tm, Hp // tn)

    itemsize_c = jnp.dtype(compute_dtype).itemsize
    cost = pl.CostEstimate(
        flops=2 * Bp * K * 4 * Hp,
        transcendentals=5 * Bp * Hp,
        bytes_accessed=(K * 4 * Hp * itemsize_c          # packed weights
                        + Bp * K * itemsize_c            # [x | h]
                        + 4 * Hp * 4                     # bias
                        + Bp * Hp * 4                    # c
                        + 2 * Bp * Hp * jnp.dtype(dtype).itemsize),  # hy, cy
    )

    hy_p, cy_p = pl.pallas_call(
        lstm_cell_kernel,
        out_shape=(
            jax.ShapeDtypeStruct((Bp, Hp), dtype),
            jax.ShapeDtypeStruct((Bp, Hp), dtype),
        ),
        grid_spec=pltpu.PrefetchScalarGridSpec(
            num_scalar_prefetch=0,
            grid=grid,
            in_specs=[
                pl.BlockSpec((tm, K), lambda i, j: (i, 0)),       # [x | h]
                pl.BlockSpec((tm, tn), lambda i, j: (i, j)),      # c
                pl.BlockSpec((K, 4 * tn), lambda i, j: (0, j)),   # packed weights
                pl.BlockSpec((1, 4 * tn), lambda i, j: (0, j)),   # packed bias
            ],
            out_specs=(
                pl.BlockSpec((tm, tn), lambda i, j: (i, j)),      # hy
                pl.BlockSpec((tm, tn), lambda i, j: (i, j)),      # cy
            ),
        ),
        compiler_params=pltpu.CompilerParams(
            dimension_semantics=("parallel", "parallel")),
        cost_estimate=cost,
    )(xh, c_p, w, b)

    hy = hy_p[:B, :H]
    cy = cy_p[:B, :H]
    return hy, (hy, cy)


def lstm_cell_pallas(x, weight_ih, weight_hh, bias_ih, bias_hh, hx=None,
                     compute_dtype=jnp.bfloat16):
    """Convenience one-shot path (prep + apply). For per-timestep use, call
    prepare_lstm_weights() once and lstm_cell_apply() per step."""
    params = prepare_lstm_weights(weight_ih, weight_hh, bias_ih, bias_hh,
                                  compute_dtype=compute_dtype)
    return lstm_cell_apply(params, x, hx)


# ---------------------------------------------------------------------------
# Pure-JAX references
# ---------------------------------------------------------------------------
def lstm_cell_ref(x, weight_ih, weight_hh, bias_ih, bias_hh, hx=None,
                  matmul_dtype=None):
    """Mirrors the PyTorch forward. If matmul_dtype is set, the matmul operands
    are cast (like the kernel does) while keeping f32 accumulation."""
    B = x.shape[0]
    H = weight_ih.shape[0] // 4
    if hx is None:
        h = jnp.zeros((B, H), dtype=x.dtype)
        c = jnp.zeros((B, H), dtype=x.dtype)
    else:
        h, c = hx
    if matmul_dtype is not None:
        xh = jnp.concatenate([x, h], axis=1).astype(matmul_dtype)
        w = jnp.concatenate([weight_ih.T, weight_hh.T], axis=0).astype(matmul_dtype)
        gates = jnp.dot(xh, w, preferred_element_type=jnp.float32) + bias_ih + bias_hh
    else:
        gates = x @ weight_ih.T + bias_ih + h @ weight_hh.T + bias_hh
    i, f, g, o = jnp.split(gates, 4, axis=1)
    i = jax.nn.sigmoid(i)
    f = jax.nn.sigmoid(f)
    g = jnp.tanh(g)
    o = jax.nn.sigmoid(o)
    cy = f * c.astype(jnp.float32) + i * g
    hy = o * jnp.tanh(cy)
    return hy.astype(x.dtype), (hy.astype(x.dtype), cy.astype(x.dtype))


if __name__ == "__main__":
    batch = 8
    input_size = 16
    hidden_size = 32

    key = jax.random.PRNGKey(0)
    k_x, k_h, k_c, k_wih, k_whh, k_bih, k_bhh = jax.random.split(key, 7)

    x = jax.random.normal(k_x, (batch, input_size), dtype=jnp.float32)
    h0 = jax.random.normal(k_h, (batch, hidden_size), dtype=jnp.float32)
    c0 = jax.random.normal(k_c, (batch, hidden_size), dtype=jnp.float32)

    weight_ih = jax.random.normal(k_wih, (4 * hidden_size, input_size), jnp.float32)
    weight_hh = jax.random.normal(k_whh, (4 * hidden_size, hidden_size), jnp.float32)
    bias_ih = jax.random.normal(k_bih, (4 * hidden_size,), jnp.float32)
    bias_hh = jax.random.normal(k_bhh, (4 * hidden_size,), jnp.float32)

    # Hoisted weight prep (done once, reused across calls / timesteps).
    params = prepare_lstm_weights(weight_ih, weight_hh, bias_ih, bias_hh)
    jax.block_until_ready(params["w"])

    # Explicit hidden state path.
    hy, (_, cy) = lstm_cell_apply(params, x, hx=(h0, c0))
    # hx=None (zero-initialized state) path.
    hy0, (_, cy0) = lstm_cell_apply(params, x)
    # Convenience one-shot path.
    hy_c, (_, cy_c) = lstm_cell_pallas(x, weight_ih, weight_hh, bias_ih, bias_hh,
                                       hx=(h0, c0))
    jax.block_until_ready((hy, cy, hy0, cy0, hy_c, cy_c))

    # Apples-to-apples check: reference that also runs the matmul in bf16.
    hy_r, (_, cy_r) = lstm_cell_ref(x, weight_ih, weight_hh, bias_ih, bias_hh,
                                    hx=(h0, c0), matmul_dtype=jnp.bfloat16)
    hy0_r, (_, cy0_r) = lstm_cell_ref(x, weight_ih, weight_hh, bias_ih, bias_hh,
                                      matmul_dtype=jnp.bfloat16)
    assert jnp.allclose(hy, hy_r, atol=2e-3, rtol=2e-3)
    assert jnp.allclose(cy, cy_r, atol=2e-3, rtol=2e-3)
    assert jnp.allclose(hy0, hy0_r, atol=2e-3, rtol=2e-3)
    assert jnp.allclose(cy0, cy0_r, atol=2e-3, rtol=2e-3)
    assert jnp.allclose(hy_c, hy_r, atol=2e-3, rtol=2e-3)
    assert jnp.allclose(cy_c, cy_r, atol=2e-3, rtol=2e-3)

    # Loose sanity vs full-f32 PyTorch-faithful math (bf16 matmul tolerance).
    hy_f, (_, cy_f) = lstm_cell_ref(x, weight_ih, weight_hh, bias_ih, bias_hh,
                                    hx=(h0, c0))
    assert jnp.allclose(hy, hy_f, atol=3e-1, rtol=3e-1)
    assert jnp.allclose(cy, cy_f, atol=3e-1, rtol=3e-1)

    print("KERNEL_OK")
</pallas_src>

<mosaic_0001>
module attributes {stable_mosaic.version = 11 : i64} {
  func.func @lstm_cell_kernel(%arg0: i32, %arg1: i32, %arg2: memref<8x48xbf16, #tpu.memory_space<vmem>>, %arg3: memref<8x128xf32, #tpu.memory_space<vmem>>, %arg4: memref<48x512xbf16, #tpu.memory_space<vmem>>, %arg5: memref<1x512xf32, #tpu.memory_space<vmem>>, %arg6: memref<8x128xf32, #tpu.memory_space<vmem>>, %arg7: memref<8x128xf32, #tpu.memory_space<vmem>>) attributes {dimension_semantics = [#tpu.dimension_semantics<parallel>, #tpu.dimension_semantics<parallel>], iteration_bounds = array<i64: 1, 1>, scalar_prefetch = 0 : i64, scratch_operands = 0 : i64, tpu.core_type = #tpu.core_type<tc>, window_params = [{transform_indices = @transform_0, window_bounds = array<i64: 8, 48>}, {transform_indices = @transform_1, window_bounds = array<i64: 8, 128>}, {transform_indices = @transform_2, window_bounds = array<i64: 48, 512>}, {transform_indices = @transform_3, window_bounds = array<i64: 1, 512>}, {transform_indices = @transform_4, window_bounds = array<i64: 8, 128>}, {transform_indices = @transform_5, window_bounds = array<i64: 8, 128>}]} {
    %c0 = arith.constant 0 : index
    %c0_0 = arith.constant 0 : index
    %0 = vector.load %arg2[%c0, %c0_0] : memref<8x48xbf16, #tpu.memory_space<vmem>>, vector<8x48xbf16>
    %c0_1 = arith.constant 0 : index
    %c0_2 = arith.constant 0 : index
    %1 = vector.load %arg4[%c0_1, %c0_2] : memref<48x512xbf16, #tpu.memory_space<vmem>>, vector<48x512xbf16>
    %cst = arith.constant dense<0.000000e+00> : vector<8x512xf32>
    %2 = tpu.matmul %0, %1, %cst {dimension_numbers = #tpu.dot_dimension_numbers<[1], [0], [0], [1], [0, 0, 1, 1], [], []>} : vector<8x48xbf16>, vector<48x512xbf16>, vector<8x512xf32> -> vector<8x512xf32>
    %c0_3 = arith.constant 0 : index
    %c0_4 = arith.constant 0 : index
    %3 = vector.load %arg5[%c0_3, %c0_4] : memref<1x512xf32, #tpu.memory_space<vmem>>, vector<1x512xf32>
    %4 = vector.broadcast %3 : vector<1x512xf32> to vector<8x512xf32>
    %5 = arith.addf %2, %4 : vector<8x512xf32>
    %6 = vector.extract_strided_slice %5 {offsets = [0, 0], sizes = [8, 384], strides = [1, 1]} : vector<8x512xf32> to vector<8x384xf32>
    %7 = arith.negf %6 : vector<8x384xf32>
    %8 = math.exp %7 : vector<8x384xf32>
    %cst_5 = arith.constant 1.000000e+00 : f32
    %9 = vector.broadcast %cst_5 : f32 to vector<8x384xf32>
    %10 = arith.addf %9, %8 : vector<8x384xf32>
    %11 = arith.divf %9, %10 : vector<8x384xf32>
    %12 = vector.extract_strided_slice %5 {offsets = [0, 384], sizes = [8, 128], strides = [1, 1]} : vector<8x512xf32> to vector<8x128xf32>
    %13 = math.tanh %12 : vector<8x128xf32>
    %14 = vector.extract_strided_slice %11 {offsets = [0, 0], sizes = [8, 128], strides = [1, 1]} : vector<8x384xf32> to vector<8x128xf32>
    %15 = vector.extract_strided_slice %11 {offsets = [0, 128], sizes = [8, 128], strides = [1, 1]} : vector<8x384xf32> to vector<8x128xf32>
    %16 = vector.extract_strided_slice %11 {offsets = [0, 256], sizes = [8, 128], strides = [1, 1]} : vector<8x384xf32> to vector<8x128xf32>
    %c0_6 = arith.constant 0 : index
    %c0_7 = arith.constant 0 : index
    %17 = vector.load %arg3[%c0_6, %c0_7] : memref<8x128xf32, #tpu.memory_space<vmem>>, vector<8x128xf32>
    %18 = arith.mulf %15, %17 : vector<8x128xf32>
    %19 = arith.mulf %14, %13 : vector<8x128xf32>
    %20 = arith.addf %18, %19 : vector<8x128xf32>
    %21 = math.tanh %20 : vector<8x128xf32>
    %22 = arith.mulf %16, %21 : vector<8x128xf32>
    %c0_8 = arith.constant 0 : index
    %c0_9 = arith.constant 0 : index
    %23 = vector.load %arg6[%c0_8, %c0_9] : memref<8x128xf32, #tpu.memory_space<vmem>>, vector<8x128xf32>
    tpu.vector_store %arg6[%c0_8, %c0_9], %22 {strides = array<i32>} : memref<8x128xf32, #tpu.memory_space<vmem>>, vector<8x128xf32>,
    %c0_10 = arith.constant 0 : index
    %c0_11 = arith.constant 0 : index
    %24 = vector.load %arg7[%c0_10, %c0_11] : memref<8x128xf32, #tpu.memory_space<vmem>>, vector<8x128xf32>
    tpu.vector_store %arg7[%c0_10, %c0_11], %20 {strides = array<i32>} : memref<8x128xf32, #tpu.memory_space<vmem>>, vector<8x128xf32>,
    return
  }
  func.func @transform_0(%arg0: i32, %arg1: i32) -> (i32, i32) {
    %c0_i32 = arith.constant 0 : i32
    %c0_i32_0 = arith.constant 0 : i32
    return %arg0, %c0_i32 : i32, i32
  }
  func.func @transform_1(%arg0: i32, %arg1: i32) -> (i32, i32) {
    %c0_i32 = arith.constant 0 : i32
    return %arg0, %arg1 : i32, i32
  }
  func.func @transform_2(%arg0: i32, %arg1: i32) -> (i32, i32) {
    %c0_i32 = arith.constant 0 : i32
    %c0_i32_0 = arith.constant 0 : i32
    return %c0_i32, %arg1 : i32, i32
  }
  func.func @transform_3(%arg0: i32, %arg1: i32) -> (i32, i32) {
    %c0_i32 = arith.constant 0 : i32
    %c0_i32_0 = arith.constant 0 : i32
    return %c0_i32, %arg1 : i32, i32
  }
  func.func @transform_4(%arg0: i32, %arg1: i32) -> (i32, i32) {
    %c0_i32 = arith.constant 0 : i32
    return %arg0, %arg1 : i32, i32
  }
  func.func @transform_5(%arg0: i32, %arg1: i32) -> (i32, i32) {
    %c0_i32 = arith.constant 0 : i32
    return %arg0, %arg1 : i32, i32
  }
}

</mosaic_0001>

<bundles_post_ra>
// kernel: tpu_custom_call.1
= control target key start
LH: loop header
LB: loop body
LE: loop exit
PB: predicated region body
PF: predicated region fallthrough
CT: control target
= control target key end

     0   :  { %11 = vsyncpa [#allocation3], 0  ;;  %s620_s0 = inlined_call_operand.hbm [shape: bf16[8,48], index: 0, kind: input, shape index: {}]   ;;  %s621_s1 = inlined_call_operand.hbm [shape: f32[8,128], index: 1, kind: input, shape index: {}]   ;;  %s622_s2 = inlined_call_operand.hbm [shape: bf16[48,512], index: 2, kind: input, shape index: {}]   ;;  %s623_s3 = inlined_call_operand.hbm [shape: f32[1,512], index: 3, kind: input, shape index: {}]   ;;  %s624_s4 = inlined_call_operand.hbm [shape: f32[8,128], index: 4, kind: output, shape index: {0}]   ;;  %s625_s5 = inlined_call_operand.hbm [shape: f32[8,128], index: 5, kind: output, shape index: {1}]  }
   0x1   :  { %12 = vsyncpa [#allocation6], 0 }
   0x2   :  { %13 = vsyncpa [#allocation9], 0 }
   0x3   :  { %14 = vsyncpa [#allocation4], 0  ;;  %s32_s20 = sshll.u32 %s621_s1, 4  ;;  %s33_s20 = int_to_ptr.hbm [resolvable:$true] %s32_s20 }
   0x4   :  { %15 = vsyncpa [#allocation12], 0  ;;  %s564_s21 = smov [#allocation5]   ;;  %s21_s25 = sshll.u32 %s620_s0, 4  ;;  %s22_s25 = int_to_ptr.hbm [resolvable:$true] %s21_s25 }
   0x5   :  { %s34_s22 = sshll.u32 %s564_s21, 4  ;;  %s565_s26 = smov [#allocation2]   ;;  %s35_s22 = int_to_ptr.vmem [resolvable:$true] %s34_s22 }
   0x6   :  { %37 = dma.hbm_to_vmem [thread:$0]  %s33_s20, 128, %s35_s22, [#allocation6]  }
   0x7   :  { %s23_s27 = sshll.u32 %s565_s26, 4  ;;  %s42_s30 = sshll.u32 %s622_s2, 4  ;;  %s24_s27 = int_to_ptr.vmem [resolvable:$true] %s23_s27  ;;  %s43_s30 = int_to_ptr.hbm [resolvable:$true] %s42_s30 }
   0x8   :  { %26 = dma.hbm_to_vmem [thread:$0]  %s22_s25, 64, %s24_s27, [#allocation3]  }
   0x9   :  { %s566_s1 = smov [#allocation7]   ;;  %s56_s9 = sshll.u32 %s623_s3, 4  ;;  %s57_s9 = int_to_ptr.hbm [resolvable:$true] %s56_s9 }
   0xa   :  { %s44_s6 = sshll.u32 %s566_s1, 4  ;;  %s567_s10 = smov 256   ;;  %s45_s6 = int_to_ptr.vmem [resolvable:$true] %s44_s6 }
   0xb   :  { %s568_s0 = smov 16   ;;  %s569_s11 = smov [#allocation8]  }
   0xc   :  { %50 = dma.hbm_to_vmem [thread:$0]  %s43_s30, 1536, %s45_s6, [#allocation6], %s567_s10, %s567_s10, %s568_s0  }
   0xd   :  { %s58_s12 = sshll.u32 %s569_s11, 4  ;;  %s59_s12 = int_to_ptr.vmem [resolvable:$true] %s58_s12 }
   0xe   :  { %61 = dma.hbm_to_vmem [thread:$0]  %s57_s9, 64, %s59_s12, [#allocation9]  }
   0xf   :  { %554 = dma.done.wait [#allocation3], 64  }
  0x10   :  { %555 = vsyncadd [#allocation3], 4294967232 }
  0x11   :  { %556 = dma.done.wait [#allocation6], 1664  }
  0x12   :  { %557 = vsyncadd [#allocation6], 4294965632 }
  0x13   :  { %558 = dma.done.wait [#allocation9], 64  }
  0x14   :  { %559 = vsyncadd [#allocation9], 4294967232  ;;  %v353_v0 = vld [vmem:[#allocation7 + $0x40] sm:$0xf]  ;;  %v384_v1 = vld [vmem:[#allocation7 + $0x4c] sm:$0xf0] }
  0x15   :  { %v382_v2 = vld [vmem:[#allocation7 + $0x44] sm:$0xf]  ;;  %v354_v3 = vor.u32 %v384_v1, %v353_v0  ;;  %v355_v4 = vld [vmem:[#allocation7 + $0x50] sm:$0xf0]  ;;  %v361_v5 = vld [vmem:[#allocation7 + $0x48] sm:$0xf] }
  0x16   :  { %v385_v6 = vld [vmem:[#allocation7 + $0x54] sm:$0xf0]  ;;  %v358_v7 = vor.u32 %v382_v2, %v355_v4  ;;  %v337_v9 = vld [vmem:[#allocation7 + $0x20] sm:$0xf]  ;;  %v380_v10 = vld [vmem:[#allocation7 + $0x2c] sm:$0xf0] }
  0x17   :  { %v362_v8 = vor.u32 %v385_v6, %v361_v5  ;;  %v378_v11 = vld [vmem:[#allocation7 + $0x24] sm:$0xf]  ;;  %171 = vmatpush.bf16.msra.mxu0 %v354_v3  ;;  %v338_v12 = vor.u32 %v380_v10, %v337_v9  ;;  %v339_v13 = vld [vmem:[#allocation7 + $0x30] sm:$0xf0]  ;;  %v345_v14 = vld [vmem:[#allocation7 + $0x28] sm:$0xf] }
  0x18   :  { %v381_v15 = vld [vmem:[#allocation7 + $0x34] sm:$0xf0]  ;;  %184 = vmatpush.bf16.msra.mxu1 %v358_v7  ;;  %v342_v16 = vor.u32 %v378_v11, %v339_v13  ;;  %v383_v18 = vld [vmem:[#allocation7 + $0x4c] sm:$0xf]  ;;  %v363_v19 = vld [vmem:[#allocation7 + $0x58] sm:$0xf0] }
  0x19   :  { %197 = vmatpush.bf16.msra.mxu2 %v362_v8  ;;  %v346_v17 = vor.u32 %v381_v15, %v345_v14  ;;  %v321_v20 = vld [vmem:[#allocation7] sm:$0xf]  ;;  %v366_v21 = vor.u32 %v383_v18, %v363_v19  ;;  %v376_v22 = vld [vmem:[#allocation7 + $0xc] sm:$0xf0]  ;;  %v374_v23 = vld [vmem:[#allocation7 + $0x4] sm:$0xf] }
  0x1a   :  { %v323_v24 = vld [vmem:[#allocation7 + $0x10] sm:$0xf0]  ;;  %v329_v25 = vld [vmem:[#allocation7 + $0x8] sm:$0xf]  ;;  %v377_v26 = vld [vmem:[#allocation7 + $0x14] sm:$0xf0]  ;;  %v322_v27 = vor.u32 %v376_v22, %v321_v20 }
  0x1b   :  { %172 = vmatpush.bf16.msra.mxu0 %v338_v12  ;;  %210 = vmatpush.bf16.msra.mxu3 %v366_v21  ;;  %v379_v28 = vld [vmem:[#allocation7 + $0x2c] sm:$0xf]  ;;  %v347_v29 = vld [vmem:[#allocation7 + $0x38] sm:$0xf0]  ;;  %v326_v30 = vor.u32 %v374_v23, %v323_v24  ;;  %v330_v31 = vor.u32 %v377_v26, %v329_v25  ;;  %v79_v35 = vld [vmem:[#allocation2] sm:$0xf] }
  0x1c   :  { %185 = vmatpush.bf16.msra.mxu1 %v342_v16  ;;  %v350_v32 = vor.u32 %v379_v28, %v347_v29  ;;  %v375_v33 = vld [vmem:[#allocation7 + $0xc] sm:$0xf]  ;;  %v331_v34 = vld [vmem:[#allocation7 + $0x18] sm:$0xf0]  ;;  %vm162_vm0 = vcmask 392192   ;;  %s570_s2 = smov [#allocation11]  }
  0x1d   :  { %198 = vmatpush.bf16.msra.mxu2 %v346_v17  ;;  %v334_v36 = vor.u32 %v375_v33, %v331_v34  ;;  %v92_v37 = vld [vmem:[#allocation8] sm:$0xf]  ;;  %v276_v19 = vld [vmem:[#allocation5] sm:$0xff]  ;;  %s300_s3 = sshll.u32 %s570_s2, 4  ;;  %s302_s15 = sshll.u32 %s625_s5, 4  ;;  %s301_s3 = int_to_ptr.vmem [resolvable:$true] %s300_s3  ;;  %s303_s15 = int_to_ptr.hbm [resolvable:$true] %s302_s15 }
  0x1e   :  { %v94_v38 = vperm.slane %v92_v37, 0  ;;  %v95_v39 = vperm.slane %v92_v37, 1  ;;  %v96_v46 = vperm.slane %v92_v37, 2  ;;  %v97_v57 = vperm.slane %v92_v37, 3  ;;  %s571_s16 = smov [#allocation10]   ;;  %s291_s19 = sshll.u32 %s624_s4, 4  ;;  %s292_s19 = int_to_ptr.hbm [resolvable:$true] %s291_s19 }
  0x1f   :  { %173 = vmatpush.bf16.msra.mxu0 %v322_v27  ;;  %211 = vmatpush.bf16.msra.mxu3 %v350_v32  ;;  %s289_s17 = sshll.u32 %s571_s16, 4  ;;  %s290_s17 = int_to_ptr.vmem [resolvable:$true] %s289_s17 }
  0x20   :  { %186 = vmatpush.bf16.msra.mxu1 %v326_v30 }
  0x21   :  { %199 = vmatpush.bf16.msra.mxu2 %v330_v31 }
  0x22   :  { %367 = vmatmul.msk.bf16.vlgmr.msra.gmra.mxu0 %vm162_vm0, %v79_v35 }
  0x23   :  { %368 = vmatmul.msk.bf16.vlgmr.msra.gmra.mxu1 %vm162_vm0, %v79_v35  ;;  %212 = vmatpush.bf16.msra.mxu3 %v334_v36 }
  0x24   :  { %369 = vmatmul.msk.bf16.vlgmr.msra.gmra.mxu2 %vm162_vm0, %v79_v35 }
  0x26   :  { %370 = vmatmul.msk.bf16.vlgmr.msra.gmra.mxu3 %vm162_vm0, %v79_v35 }
  0x9f   :  { %v175_v40 = vpop.f32.mrf.mxu0 }
  0xa0   :  { %v176_v41 = vadd.f32 %v175_v40, %v94_v38  ;;  %v188_v42 = vpop.f32.mrf.mxu1 }
  0xa1   :  { %v189_v43 = vadd.f32 %v188_v42, %v95_v39 }
  0xa2   :  { %v371_v44 = vmul.f32 -1.442695, %v176_v41 }
  0xa3   :  { %v372_v45 = vmul.f32 -1.442695, %v189_v43 }
  0xa4   :  { %394 = vpow2.f32 %v371_v44 }
  0xa5   :  { %396 = vpow2.f32 %v372_v45 }
  0xa7   :  { %v201_v47 = vpop.f32.mrf.mxu2  ;;  %v177_v49 = vpop.f32.mrf.mxu0 }
  0xa8   :  { %v202_v48 = vadd.f32 %v201_v47, %v96_v46  ;;  %v190_v50 = vpop.f32.mrf.mxu1 }
  0xa9   :  { %v214_v53 = vpop.f32.mrf.mxu3 }
  0xaa   :  { %v373_v51 = vmul.f32 -1.442695, %v202_v48  ;;  %v395_v52 = vpop.eup %394  ;;  %v215_v60 = vadd.f32 %v214_v53, %v97_v57 }
  0xab   :  { %v397_v54 = vpop.eup %396  ;;  %v227_v55 = vadd.f32 1.0, %v395_v52 }
  0xac   :  { %398 = vpow2.f32 %v373_v51  ;;  %v228_v56 = vadd.f32 1.0, %v397_v54 }
  0xad   :  { %400 = vrcp.f32 %v227_v55  ;;  %v241_v5 = vand.u32 2147483648, %v227_v55  ;;  %v239_v8 = vand.u32 2147483647, %v227_v55  ;;  %vm235_vm3 = vweird.f32 %v227_v55 }
  0xae   :  { %402 = vrcp.f32 %v228_v56  ;;  %v256_v6 = vand.u32 2147483648, %v228_v56  ;;  %v254_v10 = vand.u32 2147483647, %v228_v56  ;;  %vm250_vm4 = vweird.f32 %v228_v56 }
  0xaf   :  { %v203_v58 = vpop.f32.mrf.mxu2  ;;  %v242_v15 = vor.u32 1.1754944e-38, %v241_v5  ;;  %vm240_vm7 = vcmp.eq.f32.partialorder %v239_v8, 8.507059e+37 }
  0xb0   :  { %v257_v17 = vor.u32 1.1754944e-38, %v256_v6  ;;  %vm255_vm8 = vcmp.eq.f32.partialorder %v254_v10, 8.507059e+37 }
  0xb1   :  { %v216_v62 = vpop.f32.mrf.mxu3 }
  0xb2   :  { %v399_v59 = vpop.eup %398 }
  0xb3   :  { %v229_v61 = vadd.f32 1.0, %v399_v59  ;;  %v401_v63 = vpop.eup %400 }
  0xb4   :  { %v403_v0 = vpop.eup %402  ;;  %v231_v1 = vmul.f32 %v401_v63, %v227_v55  ;;  %vm236_vm1 = vweird.f32 %v401_v63 }
  0xb5   :  { %404 = vrcp.f32 %v229_v61  ;;  %v246_v2 = vmul.f32 %v403_v0, %v228_v56  ;;  %vm251_vm2 = vweird.f32 %v403_v0  ;;  %vm237_vm5 = vmor %vm235_vm3, %vm236_vm1  ;;  %v271_v29 = vand.u32 2147483648, %v229_v61 }
  0xb6   :  { %406 = vtanh.f32 %v215_v60  ;;  %v232_v3 = vsub.f32 1.0, %v231_v1  ;;  %vm252_vm6 = vmor %vm250_vm4, %vm251_vm2  ;;  %vm265_vm10 = vweird.f32 %v229_v61  ;;  %v269_v30 = vand.u32 2147483647, %v229_v61 }
  0xb7   :  { %v247_v4 = vsub.f32 1.0, %v246_v2  ;;  %v272_v32 = vor.u32 1.1754944e-38, %v271_v29 }
  0xb8   :  { %v233_v7 = vmul.f32 %v401_v63, %v232_v3  ;;  %vm270_vm12 = vcmp.eq.f32.partialorder %v269_v30, 8.507059e+37 }
  0xb9   :  { %v248_v9 = vmul.f32 %v403_v0, %v247_v4 }
  0xba   :  { %v234_v12 = vadd.f32 %v401_v63, %v233_v7 }
  0xbb   :  { %v405_v11 = vpop.eup %404  ;;  %v249_v16 = vadd.f32 %v403_v0, %v248_v9 }
  0xbc   :  { %v407_v13 = vpop.eup %406  ;;  %v261_v14 = vmul.f32 %v405_v11, %v229_v61  ;;  %v238_v18 = vsel %vm237_vm5, %v401_v63, %v234_v12  ;;  %vm266_vm9 = vweird.f32 %v405_v11 }
  0xbd   :  { %v243_v21 = vsel %vm240_vm7, %v242_v15, %v238_v18  ;;  %v253_v22 = vsel %vm252_vm6, %v403_v0, %v249_v16  ;;  %vm267_vm11 = vmor %vm265_vm10, %vm266_vm9 }
  0xbe   :  { %v262_v20 = vsub.f32 1.0, %v261_v14  ;;  %v258_v23 = vsel %vm255_vm8, %v257_v17, %v253_v22  ;;  %v278_v24 = vmul.f32 %v407_v13, %v243_v21 }
  0xbf   :  { %v277_v25 = vmul.f32 %v276_v19, %v258_v23 }
  0xc0   :  { %v263_v26 = vmul.f32 %v405_v11, %v262_v20 }
  0xc1   :  { %v279_v27 = vadd.f32 %v278_v24, %v277_v25 }
  0xc2   :  { %v264_v28 = vadd.f32 %v405_v11, %v263_v26 }
  0xc3   :  { %408 = vtanh.f32 %v279_v27  ;;  %283 = vst [vmem:[#allocation11] sm:$0xff] %v279_v27 }
  0xc4   :  { %305 = dma.vmem_to_hbm [thread:$0]  %s301_s3, 128, %s303_s15, [#allocation12]   ;;  %v268_v31 = vsel %vm267_vm11, %v405_v11, %v264_v28 }
  0xc5   :  { %v273_v34 = vsel %vm270_vm12, %v272_v32, %v268_v31 }
  0xc9   :  { %v409_v33 = vpop.eup %408 }
  0xca   :  { %v281_v35 = vmul.f32 %v409_v33, %v273_v34 }
  0xcc   :  { %282 = vst [vmem:[#allocation10] sm:$0xff] %v281_v35 }
  0xcd   :  { %294 = dma.vmem_to_hbm [thread:$0]  %s290_s17, 128, %s292_s19, [#allocation4]  }
  0xce   :  { %560 = dma.done.wait [#allocation4], 128  }
  0xcf   :  { %561 = vsyncadd [#allocation4], 4294967168 }
  0xd0   :  { %562 = dma.done.wait [#allocation12], 128  }
  0xd1   :  { %563 = vsyncadd [#allocation12], 4294967168 }
  0xd2   :  { %314 = vsyncpa [#allocation3], 1 }
  0xd3   :  { %315 = vsyncpa [#allocation6], 1 }
  0xd4   :  { %316 = vsyncpa [#allocation9], 1 }
  0xd5   :  { %317 = vsyncpa [#allocation4], 1 }
  0xd6   :  { %318 = vsyncpa [#allocation12], 1 }

</bundles_post_ra>
